<compile_context>
chip_gen: v6e
topology: v6e:2x2x1
jax: 0.10.0
libtpu: 0.0.40
codegen_flags: <defaults>
</compile_context>

<pallas_src>
import jax
import jax.numpy as jnp
from jax import lax
from jax.experimental import pallas as pl
from jax.experimental.pallas import tpu as pltpu

_EPS = 1e-5


# ----------------------------- fused Pallas kernel ---------------------------

def _make_fused_block_kernel(H, W, C):
    WC = W * C

    def kernel(x_ref, w1_ref, s1_ref, b1_ref, w2_ref, s2_ref, b2_ref, out_ref):
        x2d = x_ref[0]                                     # (H, W*C), lane-dense
        row = lax.broadcasted_iota(jnp.int32, (H, WC), 0)
        top = row == 0
        bot = row == H - 1

        def conv_bn(a, w_ref, s_ref, b_ref):
            # Row halo (zero 'same' padding) via XLU roll + VPU mask.
            up = jnp.where(top, 0.0, pltpu.roll(a, 1, 0))       # a[h-1]
            dn = jnp.where(bot, 0.0, pltpu.roll(a, H - 1, 0))   # a[h+1]
            # (H, 3*W*C); column index = kh*W*C + w'*C + ci  (lane-aligned concat)
            lhs = jnp.concatenate([up, a, dn], axis=1)
            # One MXU matmul, K = 3*W*C. Column taps + width zero-padding are
            # folded into the Toeplitz-structured weight.
            y = jnp.dot(lhs, w_ref[...], preferred_element_type=jnp.float32)
            return y * s_ref[...] + b_ref[...]                  # folded BN affine

        h = jnp.maximum(conv_bn(x2d, w1_ref, s1_ref, b1_ref), 0.0)
        y = conv_bn(h, w2_ref, s2_ref, b2_ref) + x2d            # residual, in VMEM
        out_ref[0] = jnp.maximum(y, 0.0)                        # lane-dense store

    return kernel


def _fused_block_call(x3d, w1t, s1t, b1t, w2t, s2t, b2t, *, H, W, C):
    N = x3d.shape[0]
    WC = W * C
    K = 3 * WC
    kernel = _make_fused_block_kernel(H, W, C)
    wspec = pl.BlockSpec((K, WC), lambda n: (0, 0))     # grid-constant -> resident
    vspec = pl.BlockSpec((1, WC), lambda n: (0, 0))
    return pl.pallas_call(
        kernel,
        out_shape=jax.ShapeDtypeStruct((N, H, WC), jnp.float32),
        grid=(N,),
        in_specs=[
            pl.BlockSpec((1, H, WC), lambda n: (n, 0, 0)),
            wspec, vspec, vspec,
            wspec, vspec, vspec,
        ],
        out_specs=pl.BlockSpec((1, H, WC), lambda n: (n, 0, 0)),
        compiler_params=pltpu.CompilerParams(
            dimension_semantics=("parallel",),
            vmem_limit_bytes=32 * 1024 * 1024,   # safe budget on v5e/v6e/v7x
        ),
    )(x3d, w1t, s1t, b1t, w2t, s2t, b2t)


# ------------------------- parameter preprocessing ---------------------------

def _toeplitz_weight(w_oihw, W):
    """(Cout, Cin, 3, 3) OIHW -> (3*W*Cin, W*Cout) column-Toeplitz matrix.

    Row index = kh*W*Cin + w'*Cin + ci (kh in {0,1,2} = input rows h-1,h,h+1),
    col index = w*Cout + co, entry = weight[co, ci, kh, w'-w+1] when
    0 <= w'-w+1 <= 2 else 0 (the zeros realize the width 'same' padding).
    """
    Cout, Cin = w_oihw.shape[0], w_oihw.shape[1]
    w3 = jnp.transpose(w_oihw, (2, 3, 1, 0)).astype(jnp.float32)  # (kh,kw,ci,co)
    shift = jnp.stack(
        [jnp.eye(W, W, k=1 - kw, dtype=jnp.float32) for kw in range(3)])  # (kw,w',w)
    toep = jnp.einsum("xvw,kxio->kviwo", shift, w3)               # (kh,w',ci,w,co)
    return toep.reshape(3 * W * Cin, W * Cout)


def _fold_bn_tiled(conv_bias, gamma, beta, mean, var, W):
    scale = gamma / jnp.sqrt(var + _EPS)
    bias = (conv_bias - mean) * scale + beta
    # tile per-channel affine across the W*C lane axis (lane = w*C + c)
    return (jnp.tile(scale, W)[None, :].astype(jnp.float32),
            jnp.tile(bias, W)[None, :].astype(jnp.float32))


# ------------------------------- Block forward --------------------------------

def block_forward_nhwc(x_nhwc, p):
    """Block.forward for stride=1, identity_downsample=None, NHWC activations."""
    N, H, W, C = x_nhwc.shape
    w1t = _toeplitz_weight(p["w1"], W)
    w2t = _toeplitz_weight(p["w2"], W)
    s1t, b1t = _fold_bn_tiled(p["b1"], p["gamma1"], p["beta1"],
                              p["mean1"], p["var1"], W)
    s2t, b2t = _fold_bn_tiled(p["b2"], p["gamma2"], p["beta2"],
                              p["mean2"], p["var2"], W)
    x3d = x_nhwc.astype(jnp.float32).reshape(N, H, W * C)   # free, lane-dense
    y3d = _fused_block_call(x3d, w1t, s1t, b1t, w2t, s2t, b2t, H=H, W=W, C=C)
    return y3d.reshape(N, H, W, C)


def block_forward(x_nchw, p):
    """NCHW wrapper (conversion done once at the network boundary)."""
    x_nhwc = jnp.transpose(x_nchw, (0, 2, 3, 1))
    y_nhwc = block_forward_nhwc(x_nhwc, p)
    return jnp.transpose(y_nhwc, (0, 3, 1, 2))


# ------------------------------ pure-JAX reference ----------------------------

def ref_block(x, p):
    def conv(x, w, b):
        y = lax.conv_general_dilated(x, w, (1, 1), "SAME",
                                     dimension_numbers=("NCHW", "OIHW", "NCHW"))
        return y + b[None, :, None, None]

    def bn(x, gamma, beta, mean, var):
        return ((x - mean[None, :, None, None])
                / jnp.sqrt(var[None, :, None, None] + _EPS)
                * gamma[None, :, None, None] + beta[None, :, None, None])

    h = jax.nn.relu(bn(conv(x, p["w1"], p["b1"]),
                       p["gamma1"], p["beta1"], p["mean1"], p["var1"]))
    y = bn(conv(h, p["w2"], p["b2"]),
           p["gamma2"], p["beta2"], p["mean2"], p["var2"])
    return jax.nn.relu(y + x)


# ----------------------------------- main --------------------------------------

if __name__ == "__main__":
    # in_channels == intermediate_channels (stride=1, no downsample path)
    N, C, H, W = 2, 8, 16, 16        # W*C = 128 -> exactly lane-dense
    key = jax.random.PRNGKey(0)
    ks = jax.random.split(key, 12)

    params = {
        "w1": 0.1 * jax.random.normal(ks[0], (C, C, 3, 3), jnp.float32),
        "b1": 0.1 * jax.random.normal(ks[1], (C,), jnp.float32),
        "gamma1": 1.0 + 0.1 * jax.random.normal(ks[2], (C,), jnp.float32),
        "beta1": 0.1 * jax.random.normal(ks[3], (C,), jnp.float32),
        "mean1": 0.1 * jax.random.normal(ks[4], (C,), jnp.float32),
        "var1": 0.5 + jax.random.uniform(ks[5], (C,), jnp.float32),
        "w2": 0.1 * jax.random.normal(ks[6], (C, C, 3, 3), jnp.float32),
        "b2": 0.1 * jax.random.normal(ks[7], (C,), jnp.float32),
        "gamma2": 1.0 + 0.1 * jax.random.normal(ks[8], (C,), jnp.float32),
        "beta2": 0.1 * jax.random.normal(ks[9], (C,), jnp.float32),
        "mean2": 0.1 * jax.random.normal(ks[10], (C,), jnp.float32),
        "var2": 0.5 + jax.random.uniform(ks[11], (C,), jnp.float32),
    }
    x = jax.random.normal(jax.random.PRNGKey(42), (N, C, H, W), jnp.float32)

    out = jax.block_until_ready(jax.jit(block_forward)(x, params))
    ref = jax.block_until_ready(ref_block(x, params))

    assert out.shape == (N, C, H, W)
    assert jnp.allclose(out, ref, rtol=1e-3, atol=2e-3), float(
        jnp.max(jnp.abs(out - ref)))
    print("KERNEL_OK")
</pallas_src>

<mosaic_0001>
module attributes {stable_mosaic.version = 11 : i64} {
  func.func @kernel(%arg0: i32, %arg1: memref<1x16x128xf32, #tpu.memory_space<vmem>>, %arg2: memref<384x128xf32, #tpu.memory_space<vmem>>, %arg3: memref<1x128xf32, #tpu.memory_space<vmem>>, %arg4: memref<1x128xf32, #tpu.memory_space<vmem>>, %arg5: memref<384x128xf32, #tpu.memory_space<vmem>>, %arg6: memref<1x128xf32, #tpu.memory_space<vmem>>, %arg7: memref<1x128xf32, #tpu.memory_space<vmem>>, %arg8: memref<1x16x128xf32, #tpu.memory_space<vmem>>) attributes {dimension_semantics = [#tpu.dimension_semantics<parallel>], iteration_bounds = array<i64: 2>, scalar_prefetch = 0 : i64, scratch_operands = 0 : i64, tpu.core_type = #tpu.core_type<tc>, window_params = [{transform_indices = @transform_0, window_bounds = array<i64: 1, 16, 128>}, {pipeline_mode = #tpu.pipeline_mode<synchronous>, transform_indices = @transform_1, window_bounds = array<i64: 384, 128>}, {pipeline_mode = #tpu.pipeline_mode<synchronous>, transform_indices = @transform_2, window_bounds = array<i64: 1, 128>}, {pipeline_mode = #tpu.pipeline_mode<synchronous>, transform_indices = @transform_3, window_bounds = array<i64: 1, 128>}, {pipeline_mode = #tpu.pipeline_mode<synchronous>, transform_indices = @transform_4, window_bounds = array<i64: 384, 128>}, {pipeline_mode = #tpu.pipeline_mode<synchronous>, transform_indices = @transform_5, window_bounds = array<i64: 1, 128>}, {pipeline_mode = #tpu.pipeline_mode<synchronous>, transform_indices = @transform_6, window_bounds = array<i64: 1, 128>}, {transform_indices = @transform_7, window_bounds = array<i64: 1, 16, 128>}]} {
    %c0 = arith.constant 0 : index
    %c0_0 = arith.constant 0 : index
    %c0_1 = arith.constant 0 : index
    %0 = vector.load %arg1[%c0, %c0_0, %c0_1] : memref<1x16x128xf32, #tpu.memory_space<vmem>>, vector<1x16x128xf32>
    %1 = vector.shape_cast %0 : vector<1x16x128xf32> to vector<16x128xf32>
    %2 = tpu.iota {dimensions = array<i32: 0>} : vector<16x128xi32>
    %c0_i32 = arith.constant 0 : i32
    %3 = vector.broadcast %c0_i32 : i32 to vector<16x128xi32>
    %4 = arith.cmpi eq, %2, %3 : vector<16x128xi32>
    %c15_i32 = arith.constant 15 : i32
    %5 = vector.broadcast %c15_i32 : i32 to vector<16x128xi32>
    %6 = arith.cmpi eq, %2, %5 : vector<16x128xi32>
    %c1_i32 = arith.constant 1 : i32
    %7 = tpu.dynamic_rotate %1 by %c1_i32 dim 0 : vector<16x128xf32>, i32 -> vector<16x128xf32>
    %cst = arith.constant 0.000000e+00 : f32
    %8 = vector.broadcast %cst : f32 to vector<16x128xf32>
    %9 = arith.select %4, %8, %7 : vector<16x128xi1>, vector<16x128xf32>
    %c15_i32_2 = arith.constant 15 : i32
    %10 = tpu.dynamic_rotate %1 by %c15_i32_2 dim 0 : vector<16x128xf32>, i32 -> vector<16x128xf32>
    %cst_3 = arith.constant 0.000000e+00 : f32
    %11 = vector.broadcast %cst_3 : f32 to vector<16x128xf32>
    %12 = arith.select %6, %11, %10 : vector<16x128xi1>, vector<16x128xf32>
    %13 = tpu.concatenate %9, %1, %12 in 1 : vector<16x128xf32>, vector<16x128xf32>, vector<16x128xf32> -> vector<16x384xf32>
    %c0_4 = arith.constant 0 : index
    %c0_5 = arith.constant 0 : index
    %14 = vector.load %arg2[%c0_4, %c0_5] : memref<384x128xf32, #tpu.memory_space<vmem>>, vector<384x128xf32>
    %cst_6 = arith.constant dense<0.000000e+00> : vector<16x128xf32>
    %15 = tpu.matmul %13, %14, %cst_6 {dimension_numbers = #tpu.dot_dimension_numbers<[1], [0], [0], [1], [0, 0, 1, 1], [], []>} : vector<16x384xf32>, vector<384x128xf32>, vector<16x128xf32> -> vector<16x128xf32>
    %c0_7 = arith.constant 0 : index
    %c0_8 = arith.constant 0 : index
    %16 = vector.load %arg3[%c0_7, %c0_8] : memref<1x128xf32, #tpu.memory_space<vmem>>, vector<1x128xf32>
    %17 = vector.broadcast %16 : vector<1x128xf32> to vector<16x128xf32>
    %18 = arith.mulf %15, %17 : vector<16x128xf32>
    %c0_9 = arith.constant 0 : index
    %c0_10 = arith.constant 0 : index
    %19 = vector.load %arg4[%c0_9, %c0_10] : memref<1x128xf32, #tpu.memory_space<vmem>>, vector<1x128xf32>
    %20 = vector.broadcast %19 : vector<1x128xf32> to vector<16x128xf32>
    %21 = arith.addf %18, %20 : vector<16x128xf32>
    %cst_11 = arith.constant 0.000000e+00 : f32
    %22 = vector.broadcast %cst_11 : f32 to vector<16x128xf32>
    %23 = arith.maximumf %21, %22 : vector<16x128xf32>
    %c1_i32_12 = arith.constant 1 : i32
    %24 = tpu.dynamic_rotate %23 by %c1_i32_12 dim 0 : vector<16x128xf32>, i32 -> vector<16x128xf32>
    %cst_13 = arith.constant 0.000000e+00 : f32
    %25 = vector.broadcast %cst_13 : f32 to vector<16x128xf32>
    %26 = arith.select %4, %25, %24 : vector<16x128xi1>, vector<16x128xf32>
    %c15_i32_14 = arith.constant 15 : i32
    %27 = tpu.dynamic_rotate %23 by %c15_i32_14 dim 0 : vector<16x128xf32>, i32 -> vector<16x128xf32>
    %cst_15 = arith.constant 0.000000e+00 : f32
    %28 = vector.broadcast %cst_15 : f32 to vector<16x128xf32>
    %29 = arith.select %6, %28, %27 : vector<16x128xi1>, vector<16x128xf32>
    %30 = tpu.concatenate %26, %23, %29 in 1 : vector<16x128xf32>, vector<16x128xf32>, vector<16x128xf32> -> vector<16x384xf32>
    %c0_16 = arith.constant 0 : index
    %c0_17 = arith.constant 0 : index
    %31 = vector.load %arg5[%c0_16, %c0_17] : memref<384x128xf32, #tpu.memory_space<vmem>>, vector<384x128xf32>
    %cst_18 = arith.constant dense<0.000000e+00> : vector<16x128xf32>
    %32 = tpu.matmul %30, %31, %cst_18 {dimension_numbers = #tpu.dot_dimension_numbers<[1], [0], [0], [1], [0, 0, 1, 1], [], []>} : vector<16x384xf32>, vector<384x128xf32>, vector<16x128xf32> -> vector<16x128xf32>
    %c0_19 = arith.constant 0 : index
    %c0_20 = arith.constant 0 : index
    %33 = vector.load %arg6[%c0_19, %c0_20] : memref<1x128xf32, #tpu.memory_space<vmem>>, vector<1x128xf32>
    %34 = vector.broadcast %33 : vector<1x128xf32> to vector<16x128xf32>
    %35 = arith.mulf %32, %34 : vector<16x128xf32>
    %c0_21 = arith.constant 0 : index
    %c0_22 = arith.constant 0 : index
    %36 = vector.load %arg7[%c0_21, %c0_22] : memref<1x128xf32, #tpu.memory_space<vmem>>, vector<1x128xf32>
    %37 = vector.broadcast %36 : vector<1x128xf32> to vector<16x128xf32>
    %38 = arith.addf %35, %37 : vector<16x128xf32>
    %39 = arith.addf %38, %1 : vector<16x128xf32>
    %cst_23 = arith.constant 0.000000e+00 : f32
    %40 = vector.broadcast %cst_23 : f32 to vector<16x128xf32>
    %41 = arith.maximumf %39, %40 : vector<16x128xf32>
    %c0_24 = arith.constant 0 : index
    %c0_25 = arith.constant 0 : index
    %c0_26 = arith.constant 0 : index
    %42 = vector.load %arg8[%c0_24, %c0_25, %c0_26] : memref<1x16x128xf32, #tpu.memory_space<vmem>>, vector<1x16x128xf32>
    %43 = vector.shape_cast %42 : vector<1x16x128xf32> to vector<16x128xf32>
    %44 = vector.shape_cast %41 : vector<16x128xf32> to vector<1x16x128xf32>
    tpu.vector_store %arg8[%c0_24, %c0_25, %c0_26], %44 {strides = array<i32>} : memref<1x16x128xf32, #tpu.memory_space<vmem>>, vector<1x16x128xf32>,
    return
  }
  func.func @transform_0(%arg0: i32) -> (i32, i32, i32) {
    %c0_i32 = arith.constant 0 : i32
    %c0_i32_0 = arith.constant 0 : i32
    %c0_i32_1 = arith.constant 0 : i32
    return %arg0, %c0_i32, %c0_i32_0 : i32, i32, i32
  }
  func.func @transform_1(%arg0: i32) -> (i32, i32) {
    %c0_i32 = arith.constant 0 : i32
    %c0_i32_0 = arith.constant 0 : i32
    %c0_i32_1 = arith.constant 0 : i32
    return %c0_i32, %c0_i32_0 : i32, i32
  }
  func.func @transform_2(%arg0: i32) -> (i32, i32) {
    %c0_i32 = arith.constant 0 : i32
    %c0_i32_0 = arith.constant 0 : i32
    %c0_i32_1 = arith.constant 0 : i32
    return %c0_i32, %c0_i32_0 : i32, i32
  }
  func.func @transform_3(%arg0: i32) -> (i32, i32) {
    %c0_i32 = arith.constant 0 : i32
    %c0_i32_0 = arith.constant 0 : i32
    %c0_i32_1 = arith.constant 0 : i32
    return %c0_i32, %c0_i32_0 : i32, i32
  }
  func.func @transform_4(%arg0: i32) -> (i32, i32) {
    %c0_i32 = arith.constant 0 : i32
    %c0_i32_0 = arith.constant 0 : i32
    %c0_i32_1 = arith.constant 0 : i32
    return %c0_i32, %c0_i32_0 : i32, i32
  }
  func.func @transform_5(%arg0: i32) -> (i32, i32) {
    %c0_i32 = arith.constant 0 : i32
    %c0_i32_0 = arith.constant 0 : i32
    %c0_i32_1 = arith.constant 0 : i32
    return %c0_i32, %c0_i32_0 : i32, i32
  }
  func.func @transform_6(%arg0: i32) -> (i32, i32) {
    %c0_i32 = arith.constant 0 : i32
    %c0_i32_0 = arith.constant 0 : i32
    %c0_i32_1 = arith.constant 0 : i32
    return %c0_i32, %c0_i32_0 : i32, i32
  }
  func.func @transform_7(%arg0: i32) -> (i32, i32, i32) {
    %c0_i32 = arith.constant 0 : i32
    %c0_i32_0 = arith.constant 0 : i32
    %c0_i32_1 = arith.constant 0 : i32
    return %arg0, %c0_i32, %c0_i32_0 : i32, i32, i32
  }
}

</mosaic_0001>

<bundles_post_ra>
// kernel: tile.23
= control target key start
LH: loop header
LB: loop body
LE: loop exit
PB: predicated region body
PF: predicated region fallthrough
CT: control target
= control target key end

     0   :  { %s28_s0 = inlined_call_operand.vmem [shape: f32[8], index: 0, kind: input, shape index: {}]   ;;  %s29_s1 = inlined_call_operand.vmem [shape: f32[16,8], index: 1, kind: output, shape index: {}]  }
   0x1   :  { %v4_v0 = vld [vmem:[%s28_s0] ss:$0 sm:$0xff] }
   0x2   :  { %5 = vst [vmem:[%s29_s1] sm:$0xff] %v4_v0  ;;  %8 = vst [vmem:[%s29_s1 + $0x8] sm:$0xff] %v4_v0 }

// kernel: tile.24
= control target key start
LH: loop header
LB: loop body
LE: loop exit
PB: predicated region body
PF: predicated region fallthrough
CT: control target
= control target key end

     0   :  { %s133_s10 = smov 120   ;;  %s134_s11 = smov 104   ;;  %vm3_vm0 = vcmask 64512   ;;  %vm9_vm1 = vcmask 1048512   ;;  %vm15_vm2 = vcmask 982912   ;;  %vm21_vm3 = vcmask 917312   ;;  %s209_s0 = inlined_call_operand.vmem [shape: f32[16,8], index: 0, kind: input, shape index: {}]   ;;  %s210_s1 = inlined_call_operand.vmem [shape: f32[1,128], index: 1, kind: output, shape index: {}]  }
   0x1   :  { %v103_v0 = vld [vmem:[%s209_s0 + $0xf] sm:$0x1]   ;;  %v105_v1 = vld [vmem:[%s209_s0 + $0xd] sm:$0x1]   ;;  %v104_v2 = vld [vmem:[%s209_s0 + $0xe] sm:$0x1]  }
   0x2   :  { %7 = vrot.lane.b32.xlu0 %v103_v0, %s133_s10  ;;  %19 = vrot.lane.b32.xlu1 %v105_v1, %s134_s11  ;;  %v106_v3 = vld [vmem:[%s209_s0 + $0xc] sm:$0x1]   ;;  %s135_s16 = smov 112   ;;  %s136_s17 = smov 96   ;;  %v107_v4 = vld [vmem:[%s209_s0 + $0xb] sm:$0x1]  }
   0x3   :  { %v108_v5 = vld [vmem:[%s209_s0 + $0xa] sm:$0x1]   ;;  %v2_v6 = vld [vmem:[%s209_s0] sm:$0x1]   ;;  %s137_s24 = smov 88   ;;  %s138_s25 = smov 80  }
   0x4   :  { %4 = vst.msk [vmem:[#allocation0] sm:$0x1] %vm3_vm0, %v2_v6   ;;  %v109_v7 = vld [vmem:[%s209_s0 + $0x9] sm:$0x1]   ;;  %v110_v8 = vld [vmem:[%s209_s0 + $0x8] sm:$0x1]  }
   0x5   :  { %s139_s30 = smov 72   ;;  %s140_s2 = smov 64   ;;  %v111_v9 = vld [vmem:[%s209_s0 + $0x7] sm:$0x1]   ;;  %v112_v10 = vld [vmem:[%s209_s0 + $0x6] sm:$0x1]  }
   0x6   :  { %13 = vrot.lane.b32.xlu0 %v104_v2, %s135_s16  ;;  %25 = vrot.lane.b32.xlu1 %v106_v3, %s136_s17  ;;  %s141_s7 = smov 56   ;;  %s142_s8 = smov 48   ;;  %v113_v11 = vld [vmem:[%s209_s0 + $0x5] sm:$0x1]   ;;  %v114_v12 = vld [vmem:[%s209_s0 + $0x4] sm:$0x1]  }
   0x7   :  { %s143_s13 = smov 40   ;;  %s144_s14 = smov 32   ;;  %v115_v13 = vld [vmem:[%s209_s0 + $0x3] sm:$0x1]   ;;  %v116_v14 = vld [vmem:[%s209_s0 + $0x2] sm:$0x1]  }
   0x8   :  { %s145_s19 = smov 24   ;;  %s146_s20 = smov 16   ;;  %v117_v15 = vld [vmem:[%s209_s0 + $0x1] sm:$0x1]   ;;  %vm27_vm4 = vcmask 851712   ;;  %vm33_vm5 = vcmask 786112  }
   0x9   :  { %s147_s0 = smov 8   ;;  %vm39_vm6 = vcmask 720512   ;;  %vm45_vm7 = vcmask 654912   ;;  %vm51_vm8 = vcmask 589312   ;;  %vm57_vm9 = vcmask 523712  }
   0xa   :  { %31 = vrot.lane.b32.xlu0 %v107_v4, %s137_s24  ;;  %37 = vrot.lane.b32.xlu1 %v108_v5, %s138_s25  ;;  %vm63_vm10 = vcmask 458112   ;;  %vm69_vm11 = vcmask 392512   ;;  %vm75_vm12 = vcmask 326912   ;;  %vm81_vm13 = vcmask 261312  }
   0xb   :  { %vm87_vm14 = vcmask 195712   ;;  %vm93_vm15 = vcmask 130112  }
   0xe   :  { %43 = vrot.lane.b32.xlu0 %v109_v7, %s139_s30  ;;  %49 = vrot.lane.b32.xlu1 %v110_v8, %s140_s2 }
  0x12   :  { %55 = vrot.lane.b32.xlu0 %v111_v9, %s141_s7  ;;  %61 = vrot.lane.b32.xlu1 %v112_v10, %s142_s8 }
  0x16   :  { %67 = vrot.lane.b32.xlu0 %v113_v11, %s143_s13  ;;  %73 = vrot.lane.b32.xlu1 %v114_v12, %s144_s14 }
  0x1a   :  { %79 = vrot.lane.b32.xlu0 %v115_v13, %s145_s19  ;;  %85 = vrot.lane.b32.xlu1 %v116_v14, %s146_s20 }
  0x1e   :  { %91 = vrot.lane.b32.xlu0 %v117_v15, %s147_s0 }
  0x74   :  { %v8_v16 = vpop.permute.xlu0 %7   ;;  %v20_v17 = vpop.permute.xlu1 %19  }
  0x75   :  { %10 = vst.msk [vmem:[#allocation0] sm:$0x1] %vm9_vm1, %v8_v16  }
  0x78   :  { %v14_v18 = vpop.permute.xlu0 %13   ;;  %v26_v19 = vpop.permute.xlu1 %25  }
  0x79   :  { %16 = vst.msk [vmem:[#allocation0] sm:$0x1] %vm15_vm2, %v14_v18  }
  0x7a   :  { %22 = vst.msk [vmem:[#allocation0] sm:$0x1] %vm21_vm3, %v20_v17  }
  0x7b   :  { %28 = vst.msk [vmem:[#allocation0] sm:$0x1] %vm27_vm4, %v26_v19  }
  0x7c   :  { %v32_v20 = vpop.permute.xlu0 %31   ;;  %v38_v21 = vpop.permute.xlu1 %37  }
  0x7d   :  { %34 = vst.msk [vmem:[#allocation0] sm:$0x1] %vm33_vm5, %v32_v20  }
  0x7e   :  { %40 = vst.msk [vmem:[#allocation0] sm:$0x1] %vm39_vm6, %v38_v21  }
  0x80   :  { %v44_v22 = vpop.permute.xlu0 %43   ;;  %v50_v23 = vpop.permute.xlu1 %49  }
  0x81   :  { %46 = vst.msk [vmem:[#allocation0] sm:$0x1] %vm45_vm7, %v44_v22  }
  0x82   :  { %52 = vst.msk [vmem:[#allocation0] sm:$0x1] %vm51_vm8, %v50_v23  }
  0x84   :  { %v56_v24 = vpop.permute.xlu0 %55   ;;  %v62_v25 = vpop.permute.xlu1 %61  }
  0x85   :  { %58 = vst.msk [vmem:[#allocation0] sm:$0x1] %vm57_vm9, %v56_v24  }
  0x86   :  { %64 = vst.msk [vmem:[#allocation0] sm:$0x1] %vm63_vm10, %v62_v25  }
  0x88   :  { %v68_v26 = vpop.permute.xlu0 %67   ;;  %v74_v27 = vpop.permute.xlu1 %73  }
  0x89   :  { %70 = vst.msk [vmem:[#allocation0] sm:$0x1] %vm69_vm11, %v68_v26  }
  0x8a   :  { %76 = vst.msk [vmem:[#allocation0] sm:$0x1] %vm75_vm12, %v74_v27  }
  0x8c   :  { %v80_v28 = vpop.permute.xlu0 %79   ;;  %v86_v29 = vpop.permute.xlu1 %85  }
  0x8d   :  { %82 = vst.msk [vmem:[#allocation0] sm:$0x1] %vm81_vm13, %v80_v28  }
  0x8e   :  { %88 = vst.msk [vmem:[#allocation0] sm:$0x1] %vm87_vm14, %v86_v29  }
  0x90   :  { %v92_v30 = vpop.permute.xlu0 %91  }
  0x91   :  { %94 = vst.msk [vmem:[#allocation0] sm:$0x1] %vm93_vm15, %v92_v30  }
  0x98   :  { %v99_v31 = vld [vmem:[#allocation0] sm:$0x1] }
  0x99   :  { %102 = vst [vmem:[%s210_s1] sm:$0x1] %v99_v31 }

// kernel: block_forward.1
= control target key start
LH: loop header
LB: loop body
LE: loop exit
PB: predicated region body
PF: predicated region fallthrough
CT: control target
= control target key end

     0   :  { %s1074_s24 = smov 0   ;;  %s1453_s0 = inlined_call_operand.vmem [shape: f32[2,16,128], index: 0, kind: input, shape index: {}]   ;;  %s1454_s1 = inlined_call_operand.vmem [shape: f32[384,128], index: 1, kind: input, shape index: {}]   ;;  %s1455_s2 = inlined_call_operand.vmem [shape: f32[1,128], index: 2, kind: input, shape index: {}]   ;;  %s1456_s3 = inlined_call_operand.vmem [shape: f32[1,128], index: 3, kind: input, shape index: {}]   ;;  %s1457_s4 = inlined_call_operand.vmem [shape: f32[384,128], index: 4, kind: input, shape index: {}]   ;;  %s1458_s5 = inlined_call_operand.vmem [shape: f32[1,128], index: 5, kind: input, shape index: {}]   ;;  %s1459_s6 = inlined_call_operand.vmem [shape: f32[1,128], index: 6, kind: input, shape index: {}]   ;;  %s1460_s7 = inlined_call_operand.vmem [shape: f32[2,16,128], index: 7, kind: output, shape index: {}]  }
   0x1 LB: > { %s809_s25 = sadd.s32 4294967295, %s1032_s24   ;;  %p813_p0 = scmp.ge.s32.totalorder %s1032_s24, 1  ;;  %s1032_s24 = sphi %s1074_s24, %s17_s24  }
   0x2   : > { %p237_p1 = scmp.lt.s32.totalorder %s1032_s24, 3 }
   0x4   : > { %p238_p2 = pnand %p813_p0, %p237_p1 }
   0x5   : > { %p1138_p3 = scmp.lt.s32.totalorder (!%p238_p2), %s809_s25, 1 }
   0x6   : > { %241 = sbr.rel (%p238_p2) target bundleno = 468 (0x1d4), region = 48 }
   0xb   : > { %v333_v0 = vld [vmem:[%s1454_s1 + $0xf8] sm:$0xff]  ;;  %v332_v2 = vld [vmem:[%s1454_s1 + $0xf0] sm:$0xff]  ;;  %v331_v5 = vld [vmem:[%s1454_s1 + $0xe8] sm:$0xff]  ;;  %s1463_s25 = smov (!%p1138_p3, %s809_s25), 1  ;;  %v281_v33 = vlaneseq }
   0xc   : > { %v317_v1 = vld [vmem:[%s1454_s1 + $0x78] sm:$0xff]  ;;  %836 = vmatprep.subr.mxu0 %v333_v0  ;;  %v316_v4 = vld [vmem:[%s1454_s1 + $0x70] sm:$0xff]  ;;  %v315_v7 = vld [vmem:[%s1454_s1 + $0x68] sm:$0xff]  ;;  %s832_s22 = sshll.u32 %s1463_s25, 4 }
   0xd   : > { %v349_v3 = vld [vmem:[%s1454_s1 + $0x178] sm:$0xff]  ;;  %837 = vmatpush3.msra.mxu0 %v317_v1  ;;  %v348_v6 = vld [vmem:[%s1454_s1 + $0x170] sm:$0xff]  ;;  %v347_v8 = vld [vmem:[%s1454_s1 + $0x168] sm:$0xff]  ;;  %s273_s12 = scalar_lea.vmem %s1453_s0, %s832_s22  ;;  %v1221_v42 = vshrl.u32 %v281_v33, 7  ;;  %s278_s30 = scalar_lea.vmem %s1460_s7, %s832_s22 }
   0xe   : > { %948 = vmatprep.subr.mxu1 %v349_v3  ;;  %838 = vmatprep.subr.mxu0 %v332_v2  ;;  %v330_v9 = vld [vmem:[%s1454_s1 + $0xe0] sm:$0xff]  ;;  %v329_v12 = vld [vmem:[%s1454_s1 + $0xd8] sm:$0xff]  ;;  %v328_v15 = vld [vmem:[%s1454_s1 + $0xd0] sm:$0xff] }
   0xf   : > { %949 = vmatpush3.msra.mxu1 %v349_v3  ;;  %839 = vmatpush3.msra.mxu0 %v316_v4  ;;  %v314_v10 = vld [vmem:[%s1454_s1 + $0x60] sm:$0xff]  ;;  %v313_v13 = vld [vmem:[%s1454_s1 + $0x58] sm:$0xff]  ;;  %v312_v16 = vld [vmem:[%s1454_s1 + $0x50] sm:$0xff]  ;;  %vm290_vm0 = vcmp.lt.s32.totalorder %v1221_v42, 1  ;;  %vm297_vm1 = vcmp.lt.s32.totalorder %v1221_v42, 7  ;;  %v1251_v54 = vadd.s32 8, %v1221_v42 }
  0x10   : > { %950 = vmatprep.subr.mxu1 %v348_v6  ;;  %840 = vmatprep.subr.mxu0 %v331_v5  ;;  %v346_v11 = vld [vmem:[%s1454_s1 + $0x160] sm:$0xff]  ;;  %v345_v14 = vld [vmem:[%s1454_s1 + $0x158] sm:$0xff]  ;;  %v344_v17 = vld [vmem:[%s1454_s1 + $0x150] sm:$0xff]  ;;  %vm834_vm2 = vcmp.ne.s32.totalorder %v1221_v42, 0 }
  0x11   : > { %951 = vmatpush3.msra.mxu1 %v348_v6  ;;  %841 = vmatpush3.msra.mxu0 %v315_v7  ;;  %v327_v18 = vld [vmem:[%s1454_s1 + $0xc8] sm:$0xff]  ;;  %v326_v21 = vld [vmem:[%s1454_s1 + $0xc0] sm:$0xff]  ;;  %v325_v24 = vld [vmem:[%s1454_s1 + $0xb8] sm:$0xff]  ;;  %vm835_vm3 = vcmp.ne.s32.totalorder %v1251_v54, 15 }
  0x12   : > { %952 = vmatprep.subr.mxu1 %v347_v8  ;;  %842 = vmatprep.subr.mxu0 %v330_v9  ;;  %v311_v19 = vld [vmem:[%s1454_s1 + $0x48] sm:$0xff]  ;;  %v310_v22 = vld [vmem:[%s1454_s1 + $0x40] sm:$0xff]  ;;  %v309_v25 = vld [vmem:[%s1454_s1 + $0x38] sm:$0xff] }
  0x13   : > { %953 = vmatpush3.msra.mxu1 %v347_v8  ;;  %843 = vmatpush3.msra.mxu0 %v314_v10  ;;  %v343_v20 = vld [vmem:[%s1454_s1 + $0x148] sm:$0xff]  ;;  %v342_v23 = vld [vmem:[%s1454_s1 + $0x140] sm:$0xff]  ;;  %v341_v26 = vld [vmem:[%s1454_s1 + $0x138] sm:$0xff] }
  0x14   : > { %954 = vmatprep.subr.mxu1 %v346_v11  ;;  %844 = vmatprep.subr.mxu0 %v329_v12  ;;  %v324_v27 = vld [vmem:[%s1454_s1 + $0xb0] sm:$0xff]  ;;  %v323_v30 = vld [vmem:[%s1454_s1 + $0xa8] sm:$0xff]  ;;  %v322_v34 = vld [vmem:[%s1454_s1 + $0xa0] sm:$0xff] }
  0x15   : > { %955 = vmatpush3.msra.mxu1 %v346_v11  ;;  %845 = vmatpush3.msra.mxu0 %v313_v13  ;;  %v308_v28 = vld [vmem:[%s1454_s1 + $0x30] sm:$0xff]  ;;  %v307_v31 = vld [vmem:[%s1454_s1 + $0x28] sm:$0xff]  ;;  %v306_v35 = vld [vmem:[%s1454_s1 + $0x20] sm:$0xff] }
  0x16   : > { %956 = vmatprep.subr.mxu1 %v345_v14  ;;  %846 = vmatprep.subr.mxu0 %v328_v15  ;;  %v340_v29 = vld [vmem:[%s1454_s1 + $0x130] sm:$0xff]  ;;  %v339_v32 = vld [vmem:[%s1454_s1 + $0x128] sm:$0xff]  ;;  %v338_v36 = vld [vmem:[%s1454_s1 + $0x120] sm:$0xff] }
  0x17   : > { %957 = vmatpush3.msra.mxu1 %v345_v14  ;;  %847 = vmatpush3.msra.mxu0 %v312_v16  ;;  %v321_v37 = vld [vmem:[%s1454_s1 + $0x98] sm:$0xff]  ;;  %v1217_v40 = vld [vmem:[%s273_s12] sm:$0xff]  ;;  %v1219_v41 = vld [vmem:[%s273_s12 + $0x8] sm:$0xff] }
  0x18   : > { %958 = vmatprep.subr.mxu1 %v344_v17  ;;  %848 = vmatprep.subr.mxu0 %v327_v18  ;;  %v305_v38 = vld [vmem:[%s1454_s1 + $0x18] sm:$0xff]  ;;  %v320_v43 = vld [vmem:[%s1454_s1 + $0x90] sm:$0xff]  ;;  %v319_v46 = vld [vmem:[%s1454_s1 + $0x88] sm:$0xff]  ;;  %v288_v47 = vrot.slane %v1217_v40, 7  ;;  %v289_v48 = vrot.slane %v1219_v41, 7  ;;  %v295_v51 = vrot.slane %v1217_v40, 1 }
  0x19   : > { %959 = vmatpush3.msra.mxu1 %v344_v17  ;;  %849 = vmatpush3.msra.mxu0 %v311_v19  ;;  %v337_v39 = vld [vmem:[%s1454_s1 + $0x118] sm:$0xff]  ;;  %v304_v44 = vld [vmem:[%s1454_s1 + $0x10] sm:$0xff]  ;;  %v303_v49 = vld [vmem:[%s1454_s1 + $0x8] sm:$0xff]  ;;  %v296_v52 = vrot.slane %v1219_v41, 1 }
  0x1a   : > { %960 = vmatprep.subr.mxu1 %v343_v20  ;;  %850 = vmatprep.subr.mxu0 %v326_v21  ;;  %v336_v45 = vld [vmem:[%s1454_s1 + $0x110] sm:$0xff]  ;;  %v335_v50 = vld [vmem:[%s1454_s1 + $0x108] sm:$0xff]  ;;  %v318_v53 = vld [vmem:[%s1454_s1 + $0x80] sm:$0xff]  ;;  %v292_v56 = vsel %vm290_vm0, %v289_v48, %v288_v47  ;;  %v291_v62 = vsel %vm290_vm0, %v288_v47, %v289_v48 }
  0x1b   : > { %961 = vmatpush3.msra.mxu1 %v343_v20  ;;  %851 = vmatpush3.msra.mxu0 %v310_v22  ;;  %v302_v55 = vld [vmem:[%s1454_s1] sm:$0xff]  ;;  %v298_v58 = vsel %vm297_vm1, %v295_v51, %v296_v52  ;;  %v299_v59 = vsel %vm297_vm1, %v296_v52, %v295_v51  ;;  %v563_v60 = vld [vmem:[%s1457_s4 + $0xf8] sm:$0xff]  ;;  %v578_v0 = vld [vmem:[%s1457_s4 + $0x170] sm:$0xff] }
  0x1c   : > { %962 = vmatprep.subr.mxu1 %v342_v23  ;;  %852 = vmatprep.subr.mxu0 %v325_v24  ;;  %v334_v57 = vld [vmem:[%s1454_s1 + $0x100] sm:$0xff]  ;;  %v579_v61 = vld [vmem:[%s1457_s4 + $0x178] sm:$0xff]  ;;  %v562_v1 = vld [vmem:[%s1457_s4 + $0xf0] sm:$0xff] }
  0x1d   : > { %963 = vmatpush3.msra.mxu1 %v342_v23  ;;  %853 = vmatpush3.msra.mxu0 %v309_v25  ;;  %v547_v63 = vld [vmem:[%s1457_s4 + $0x78] sm:$0xff]  ;;  %v546_v2 = vld [vmem:[%s1457_s4 + $0x70] sm:$0xff]  ;;  %v577_v3 = vld [vmem:[%s1457_s4 + $0x168] sm:$0xff] }
  0x1e   : > { %964 = vmatprep.subr.mxu1 %v341_v26  ;;  %854 = vmatprep.subr.mxu0 %v324_v27  ;;  %v561_v4 = vld [vmem:[%s1457_s4 + $0xe8] sm:$0xff]  ;;  %v576_v6 = vld [vmem:[%s1457_s4 + $0x160] sm:$0xff]  ;;  %v575_v9 = vld [vmem:[%s1457_s4 + $0x158] sm:$0xff] }
  0x1f   : > { %965 = vmatpush3.msra.mxu1 %v341_v26  ;;  %855 = vmatpush3.msra.mxu0 %v308_v28  ;;  %v545_v5 = vld [vmem:[%s1457_s4 + $0x68] sm:$0xff]  ;;  %v560_v7 = vld [vmem:[%s1457_s4 + $0xe0] sm:$0xff]  ;;  %v559_v10 = vld [vmem:[%s1457_s4 + $0xd8] sm:$0xff] }
  0x20   : > { %966 = vmatprep.subr.mxu1 %v340_v29  ;;  %856 = vmatprep.subr.mxu0 %v323_v30  ;;  %v544_v8 = vld [vmem:[%s1457_s4 + $0x60] sm:$0xff]  ;;  %v543_v11 = vld [vmem:[%s1457_s4 + $0x58] sm:$0xff]  ;;  %v574_v12 = vld [vmem:[%s1457_s4 + $0x150] sm:$0xff] }
  0x21   : > { %967 = vmatpush3.msra.mxu1 %v340_v29  ;;  %857 = vmatpush3.msra.mxu0 %v307_v31  ;;  %v558_v13 = vld [vmem:[%s1457_s4 + $0xd0] sm:$0xff]  ;;  %v557_v15 = vld [vmem:[%s1457_s4 + $0xc8] sm:$0xff]  ;;  %v556_v18 = vld [vmem:[%s1457_s4 + $0xc0] sm:$0xff] }
  0x22   : > { %968 = vmatprep.subr.mxu1 %v339_v32  ;;  %858 = vmatprep.subr.mxu0 %v322_v34  ;;  %v542_v14 = vld [vmem:[%s1457_s4 + $0x50] sm:$0xff]  ;;  %v541_v16 = vld [vmem:[%s1457_s4 + $0x48] sm:$0xff]  ;;  %v540_v19 = vld [vmem:[%s1457_s4 + $0x40] sm:$0xff] }
  0x23   : > { %969 = vmatpush3.msra.mxu1 %v339_v32  ;;  %859 = vmatpush3.msra.mxu0 %v306_v35  ;;  %v573_v17 = vld [vmem:[%s1457_s4 + $0x148] sm:$0xff]  ;;  %v572_v20 = vld [vmem:[%s1457_s4 + $0x140] sm:$0xff]  ;;  %v555_v21 = vld [vmem:[%s1457_s4 + $0xb8] sm:$0xff] }
  0x24   : > { %970 = vmatprep.subr.mxu1 %v338_v36  ;;  %860 = vmatprep.subr.mxu0 %v321_v37  ;;  %v539_v22 = vld [vmem:[%s1457_s4 + $0x38] sm:$0xff]  ;;  %v554_v24 = vld [vmem:[%s1457_s4 + $0xb0] sm:$0xff]  ;;  %v553_v27 = vld [vmem:[%s1457_s4 + $0xa8] sm:$0xff] }
  0x25   : > { %971 = vmatpush3.msra.mxu1 %v338_v36  ;;  %861 = vmatpush3.msra.mxu0 %v305_v38  ;;  %v571_v23 = vld [vmem:[%s1457_s4 + $0x138] sm:$0xff]  ;;  %v538_v25 = vld [vmem:[%s1457_s4 + $0x30] sm:$0xff]  ;;  %v537_v28 = vld [vmem:[%s1457_s4 + $0x28] sm:$0xff] }
  0x26   : > { %972 = vmatprep.subr.mxu1 %v337_v39  ;;  %862 = vmatprep.subr.mxu0 %v320_v43  ;;  %v570_v26 = vld [vmem:[%s1457_s4 + $0x130] sm:$0xff]  ;;  %v569_v29 = vld [vmem:[%s1457_s4 + $0x128] sm:$0xff]  ;;  %v552_v30 = vld [vmem:[%s1457_s4 + $0xa0] sm:$0xff] }
  0x27   : > { %973 = vmatpush3.msra.mxu1 %v337_v39  ;;  %863 = vmatpush3.msra.mxu0 %v304_v44  ;;  %v536_v31 = vld [vmem:[%s1457_s4 + $0x20] sm:$0xff]  ;;  %v551_v33 = vld [vmem:[%s1457_s4 + $0x98] sm:$0xff]  ;;  %v550_v36 = vld [vmem:[%s1457_s4 + $0x90] sm:$0xff] }
  0x28   : > { %974 = vmatprep.subr.mxu1 %v336_v45  ;;  %864 = vmatprep.subr.mxu0 %v319_v46  ;;  %v568_v32 = vld [vmem:[%s1457_s4 + $0x120] sm:$0xff]  ;;  %v535_v34 = vld [vmem:[%s1457_s4 + $0x18] sm:$0xff]  ;;  %v534_v37 = vld [vmem:[%s1457_s4 + $0x10] sm:$0xff] }
  0x29   : > { %975 = vmatpush3.msra.mxu1 %v336_v45  ;;  %865 = vmatpush3.msra.mxu0 %v303_v49  ;;  %v567_v35 = vld [vmem:[%s1457_s4 + $0x118] sm:$0xff]  ;;  %v566_v38 = vld [vmem:[%s1457_s4 + $0x110] sm:$0xff]  ;;  %v549_v39 = vld [vmem:[%s1457_s4 + $0x88] sm:$0xff] }
  0x2a   : > { %976 = vmatprep.subr.mxu1 %v335_v50  ;;  %866 = vmatprep.subr.mxu0 %v318_v53  ;;  %v533_v43 = vld [vmem:[%s1457_s4 + $0x8] sm:$0xff]  ;;  %v548_v45 = vld [vmem:[%s1457_s4 + $0x80] sm:$0xff] }
  0x2b   : > { %414 = vmatprep.mubr.f32.mxu0 %v1217_v40  ;;  %867 = vmatpush3.msra.mxu0 %v302_v55  ;;  %v565_v44 = vld [vmem:[%s1457_s4 + $0x108] sm:$0xff]  ;;  %v532_v46 = vld [vmem:[%s1457_s4] sm:$0xff] }
  0x2c   : > { %977 = vmatpush3.msra.mxu1 %v335_v50  ;;  %819 = vmatmul.mubr.msk.f32.vlgmr.msra.gmra.mxu0 %vm834_vm2, %v292_v56  ;;  %v564_v47 = vld [vmem:[%s1457_s4 + $0x100] sm:$0xff] }
  0x2d   : > { %978 = vmatprep.subr.mxu1 %v334_v57  ;;  %980 = vmatprep.mubr.f32.mxu1 %v298_v58  ;;  %v822_v55 = vld [vmem:[%s1455_s2] ss:$0 sm:$0xff] }
  0x2e   : > { %979 = vmatpush3.msra.mxu1 %v334_v57  ;;  %419 = vmatprep.mubr.f32.mxu0 %v1219_v41  ;;  %v823_v58 = vld [vmem:[%s1456_s3] ss:$0 sm:$0xff] }
  0x2f   : > { %981 = vmatmul.mubr.msk.f32.vlgmr.msra.gmra.mxu1 %vm835_vm3, %v299_v59  ;;  %892 = vmatprep.subr.mxu0 %v563_v60  ;;  %v829_v54 = vld [vmem:[%s1459_s6] ss:$0 sm:$0xff] }
  0x30   : > { %983 = vmatprep.subr.mxu1 %v579_v61  ;;  %420 = vmatmul.mubr.f32.gmra.mxu0 %v291_v62 }
  0x31   : > { %984 = vmatpush3.msra.mxu1 %v579_v61  ;;  %893 = vmatpush3.msra.mxu0 %v547_v63 }
  0x32   : > { %985 = vmatprep.subr.mxu1 %v578_v0  ;;  %894 = vmatprep.subr.mxu0 %v562_v1 }
  0x33   : > { %986 = vmatpush3.msra.mxu1 %v578_v0  ;;  %895 = vmatpush3.msra.mxu0 %v546_v2 }
  0x34   : > { %987 = vmatprep.subr.mxu1 %v577_v3  ;;  %896 = vmatprep.subr.mxu0 %v561_v4 }
  0x35   : > { %988 = vmatpush3.msra.mxu1 %v577_v3  ;;  %897 = vmatpush3.msra.mxu0 %v545_v5 }
  0x36   : > { %989 = vmatprep.subr.mxu1 %v576_v6  ;;  %898 = vmatprep.subr.mxu0 %v560_v7 }
  0x37   : > { %990 = vmatpush3.msra.mxu1 %v576_v6  ;;  %899 = vmatpush3.msra.mxu0 %v544_v8 }
  0x38   : > { %991 = vmatprep.subr.mxu1 %v575_v9  ;;  %900 = vmatprep.subr.mxu0 %v559_v10 }
  0x39   : > { %992 = vmatpush3.msra.mxu1 %v575_v9  ;;  %901 = vmatpush3.msra.mxu0 %v543_v11 }
  0x3a   : > { %993 = vmatprep.subr.mxu1 %v574_v12  ;;  %902 = vmatprep.subr.mxu0 %v558_v13 }
  0x3b   : > { %994 = vmatpush3.msra.mxu1 %v574_v12  ;;  %903 = vmatpush3.msra.mxu0 %v542_v14 }
  0x3c   : > { %904 = vmatprep.subr.mxu0 %v557_v15  ;;  %995 = vmatprep.subr.mxu1 %v573_v17 }
  0x3d   : > { %905 = vmatpush3.msra.mxu0 %v541_v16  ;;  %996 = vmatpush3.msra.mxu1 %v573_v17  ;;  %v828_v16 = vld [vmem:[%s1458_s5] ss:$0 sm:$0xff] }
  0x3e   : > { %906 = vmatprep.subr.mxu0 %v556_v18  ;;  %997 = vmatprep.subr.mxu1 %v572_v20 }
  0x3f   : > { %907 = vmatpush3.msra.mxu0 %v540_v19  ;;  %998 = vmatpush3.msra.mxu1 %v572_v20 }
  0x40   : > { %908 = vmatprep.subr.mxu0 %v555_v21  ;;  %999 = vmatprep.subr.mxu1 %v571_v23 }
  0x41   : > { %909 = vmatpush3.msra.mxu0 %v539_v22  ;;  %1000 = vmatpush3.msra.mxu1 %v571_v23 }
  0x42   : > { %910 = vmatprep.subr.mxu0 %v554_v24  ;;  %1001 = vmatprep.subr.mxu1 %v570_v26 }
  0x43   : > { %911 = vmatpush3.msra.mxu0 %v538_v25  ;;  %1002 = vmatpush3.msra.mxu1 %v570_v26 }
  0x44   : > { %912 = vmatprep.subr.mxu0 %v553_v27  ;;  %1003 = vmatprep.subr.mxu1 %v569_v29 }
  0x45   : > { %913 = vmatpush3.msra.mxu0 %v537_v28  ;;  %1004 = vmatpush3.msra.mxu1 %v569_v29 }
  0x46   : > { %914 = vmatprep.subr.mxu0 %v552_v30  ;;  %1005 = vmatprep.subr.mxu1 %v568_v32 }
  0x47   : > { %915 = vmatpush3.msra.mxu0 %v536_v31  ;;  %1006 = vmatpush3.msra.mxu1 %v568_v32 }
  0x48   : > { %916 = vmatprep.subr.mxu0 %v551_v33  ;;  %1007 = vmatprep.subr.mxu1 %v567_v35 }
  0x49   : > { %917 = vmatpush3.msra.mxu0 %v535_v34  ;;  %1008 = vmatpush3.msra.mxu1 %v567_v35 }
  0x4a   : > { %918 = vmatprep.subr.mxu0 %v550_v36  ;;  %1009 = vmatprep.subr.mxu1 %v566_v38 }
  0x4b   : > { %919 = vmatpush3.msra.mxu0 %v534_v37  ;;  %1010 = vmatpush3.msra.mxu1 %v566_v38 }
  0x4c   : > { %920 = vmatprep.subr.mxu0 %v549_v39  ;;  %1011 = vmatprep.subr.mxu1 %v565_v44 }
  0x4d   : > { %921 = vmatpush3.msra.mxu0 %v533_v43  ;;  %1012 = vmatpush3.msra.mxu1 %v565_v44 }
  0x4e   : > { %922 = vmatprep.subr.mxu0 %v548_v45  ;;  %1013 = vmatprep.subr.mxu1 %v564_v47 }
  0x4f   : > { %923 = vmatpush3.msra.mxu0 %v532_v46  ;;  %1014 = vmatpush3.msra.mxu1 %v564_v47 }
  0xec   : > { %v868_v48 = vpop.f32.mrf.mxu0 }
  0xee   : > { %v869_v49 = vpop.f32.mrf.mxu0 }
  0xef   : > { %v982_v50 = vpop.f32.mrf.mxu1  ;;  %v870_v51 = vadd.f32 %v869_v49, %v868_v48 }
  0xf0   : > { %v871_v52 = vpop.f32.mrf.mxu0 }
  0xf1   : > { %v491_v53 = vpop.f32.mrf.mxu1 }
  0xf2   : > { %v492_v56 = vadd.f32 %v870_v51, %v491_v53  ;;  %v872_v57 = vpop.f32.mrf.mxu0 }
  0xf3   : > { %v873_v60 = vadd.f32 %v872_v57, %v871_v52 }
  0xf4   : > { %v507_v59 = vmul.f32 %v822_v55, %v492_v56 }
  0xf5   : > { %v497_v61 = vadd.f32 %v982_v50, %v873_v60 }
  0xf6   : > { %v516_v62 = vadd.f32 %v823_v58, %v507_v59 }
  0xf7   : > { %v508_v63 = vmul.f32 %v822_v55, %v497_v61 }
  0xf8   : > { %v518_v0 = vmax.f32 %v516_v62, 0.0 }
  0xf9   : > { %v517_v1 = vadd.f32 %v823_v58, %v508_v63 }
  0xfa   : > { %644 = vmatprep.mubr.f32.mxu0 %v518_v0  ;;  %v520_v3 = vrot.slane %v518_v0, 7  ;;  %v526_v5 = vrot.slane %v518_v0, 1 }
  0xfb   : > { %v519_v2 = vmax.f32 %v517_v1, 0.0 }
  0xfd   : > { %v521_v4 = vrot.slane %v519_v2, 7  ;;  %v527_v6 = vrot.slane %v519_v2, 1 }
  0xff   : > { %v523_v7 = vsel %vm290_vm0, %v521_v4, %v520_v3  ;;  %v528_v8 = vsel %vm297_vm1, %v526_v5, %v527_v6  ;;  %v529_v9 = vsel %vm297_vm1, %v527_v6, %v526_v5  ;;  %v522_v10 = vsel %vm290_vm0, %v520_v3, %v521_v4 }
 0x100   : > { %825 = vmatmul.mubr.msk.f32.vlgmr.msra.gmra.mxu0 %vm834_vm2, %v523_v7  ;;  %1015 = vmatprep.mubr.f32.mxu1 %v528_v8 }
 0x101   : > { %649 = vmatprep.mubr.f32.mxu0 %v519_v2  ;;  %1016 = vmatmul.mubr.msk.f32.vlgmr.msra.gmra.mxu1 %vm835_vm3, %v529_v9 }
 0x104   : > { %650 = vmatmul.mubr.f32.gmra.mxu0 %v522_v10 }
 0x1c0   : > { %v924_v11 = vpop.f32.mrf.mxu0 }
 0x1c1   : > { %v1017_v12 = vpop.f32.mrf.mxu1 }
 0x1c2   : > { %v925_v13 = vpop.f32.mrf.mxu0 }
 0x1c3   : > { %v926_v14 = vadd.f32 %v925_v13, %v924_v11  ;;  %v721_v15 = vpop.f32.mrf.mxu1 }
 0x1c4   : > { %v927_v17 = vpop.f32.mrf.mxu0 }
 0x1c5   : > { %v722_v18 = vadd.f32 %v926_v14, %v721_v15 }
 0x1c6   : > { %v928_v19 = vpop.f32.mrf.mxu0 }
 0x1c7   : > { %v737_v42 = vmul.f32 %v828_v16, %v722_v18  ;;  %v929_v20 = vadd.f32 %v928_v19, %v927_v17 }
 0x1c9   : > { %v746_v21 = vadd.f32 %v829_v54, %v737_v42  ;;  %v727_v22 = vadd.f32 %v1017_v12, %v929_v20 }
 0x1cb   : > { %v748_v23 = vadd.f32 %v746_v21, %v1217_v40  ;;  %v738_v24 = vmul.f32 %v828_v16, %v727_v22 }
 0x1cd   : > { %v750_v25 = vmax.f32 %v748_v23, 0.0  ;;  %v747_v26 = vadd.f32 %v829_v54, %v738_v24 }
 0x1cf   : > { %752 = vst [vmem:[%s278_s30] sm:$0xff] %v750_v25  ;;  %v749_v27 = vadd.f32 %v747_v26, %v1219_v41 }
 0x1d1   : > { %v751_v28 = vmax.f32 %v749_v27, 0.0 }
 0x1d3   : > { %753 = vst [vmem:[%s278_s30 + $0x8] sm:$0xff] %v751_v28 }
 0x1d4 PF: > { %s17_s24 = sadd.s32 1, %s1032_s24  }
 0x1d5   : > { %p14_p4 = scmp.ge.s32.totalorder %s17_s24, 4  }
 0x1d7   :  { %16 = sbr.rel (!%p14_p4) target bundleno = 1 (0x1), region = 78 }

</bundles_post_ra>
